<compile_context>
chip_gen: v6e
topology: v6e:2x2x1
jax: 0.10.0
libtpu: 0.0.40
codegen_flags: <defaults>
</compile_context>

<pallas_src>
import functools

import jax
import jax.numpy as jnp
from jax import lax
from jax.experimental import pallas as pl
from jax.experimental.pallas import tpu as pltpu


_NCORES = 2                     # leading "parallel" grid axis (v7x has 2 TCs)
_BLOCK_BYTES = 2 * 1024 * 1024  # ~2 MiB per input block (fits v5e/v6e/v7x VMEM)


def _mae_mse_kernel(pred_ref, tgt_ref, out_ref, acc_abs_ref, acc_sq_ref,
                    *, rows, row_tile, cols, steps_per_core):
    c = pl.program_id(0)   # core split (parallel)
    i = pl.program_id(1)   # reduction over row tiles (arbitrary)

    @pl.when(i == 0)
    def _init():
        acc_abs_ref[...] = jnp.zeros_like(acc_abs_ref)
        acc_sq_ref[...] = jnp.zeros_like(acc_sq_ref)

    # f32 compute (v5e has no bf16 VPU datapath; kernel is HBM-bound anyway).
    d = pred_ref[...].astype(jnp.float32) - tgt_ref[...].astype(jnp.float32)

    # Global block index handled by this (c, i) step. The index_map clamps the
    # DMA so it never reads out of range; rows_valid <= 0 masks out the
    # duplicated (clamped) blocks so they contribute nothing.
    gb = c * steps_per_core + i
    rows_valid = rows - gb * row_tile

    @pl.when(rows_valid >= row_tile)        # hot path: full tile, no masking
    def _full():
        acc_abs_ref[...] += jnp.abs(d)
        acc_sq_ref[...] += d * d

    @pl.when(rows_valid < row_tile)         # ragged / duplicated tail tile
    def _tail():
        mask = lax.broadcasted_iota(jnp.int32, (row_tile, cols), 0) < rows_valid
        dm = jnp.where(mask, d, 0.0)
        acc_abs_ref[...] += jnp.abs(dm)
        acc_sq_ref[...] += dm * dm

    @pl.when(i == steps_per_core - 1)
    def _finish():
        # Single cross-lane reduction per metric per core, done once.
        out_ref[0, 0] = jnp.full((8, 128), jnp.sum(acc_abs_ref[...]), jnp.float32)
        out_ref[0, 1] = jnp.full((8, 128), jnp.sum(acc_sq_ref[...]), jnp.float32)


@jax.jit
def mae_loss(pred, target):
    """Returns (mae, mse); mae is the module's return value."""
    if pred.shape != target.shape:
        raise ValueError(f"Shape mismatch: pred {pred.shape} vs target {target.shape}")

    n = pred.size

    # Lane-dense layout: pick the largest cols in {512, 256, 128} dividing the
    # element count so no padding copy is needed; otherwise pad the flat array
    # by < 128 zeros (zeros contribute 0 to both sums; mean uses true n).
    for cols in (512, 256, 128):
        if n % cols == 0:
            pad = 0
            break
    else:
        cols = 128
        pad = (-n) % cols

    p_flat = pred.reshape(-1)
    t_flat = target.reshape(-1)
    if pad:
        p_flat = jnp.pad(p_flat, (0, pad))
        t_flat = jnp.pad(t_flat, (0, pad))

    rows = (n + pad) // cols
    row_tile = _BLOCK_BYTES // (cols * 4)    # multiple of 8 for all cols above
    if rows < row_tile:
        row_tile = rows                      # single block == full array dims

    p2 = p_flat.reshape(rows, cols)
    t2 = t_flat.reshape(rows, cols)

    n_blocks = -(-rows // row_tile)
    steps_per_core = -(-n_blocks // _NCORES)

    def in_map(c, i):
        # Clamp so the DMA never targets a fully out-of-range block; the
        # duplicated block's contribution is masked to zero inside the kernel.
        return (jnp.minimum(c * steps_per_core + i, n_blocks - 1), 0)

    kernel = functools.partial(
        _mae_mse_kernel, rows=rows, row_tile=row_tile, cols=cols,
        steps_per_core=steps_per_core)

    partials = pl.pallas_call(
        kernel,
        out_shape=jax.ShapeDtypeStruct((_NCORES, 2, 8, 128), jnp.float32),
        grid_spec=pltpu.PrefetchScalarGridSpec(
            num_scalar_prefetch=0,
            grid=(_NCORES, steps_per_core),
            in_specs=[
                pl.BlockSpec((row_tile, cols), in_map),
                pl.BlockSpec((row_tile, cols), in_map),
            ],
            out_specs=pl.BlockSpec((1, 2, 8, 128), lambda c, i: (c, 0, 0, 0)),
            scratch_shapes=[
                pltpu.VMEM((row_tile, cols), jnp.float32),
                pltpu.VMEM((row_tile, cols), jnp.float32),
            ],
        ),
        compiler_params=pltpu.CompilerParams(
            dimension_semantics=("parallel", "arbitrary"),
            vmem_limit_bytes=32 * 1024 * 1024,
        ),
    )(p2, t2)

    sum_abs = jnp.sum(partials[:, 0, 0, 0])
    sum_sq = jnp.sum(partials[:, 1, 0, 0])
    inv_n = 1.0 / jnp.float32(n)
    # TODO(synk): batch_count / periodic printing / last_losses dict are
    # host-side Python state in the PyTorch module, not kernel work.
    return sum_abs * inv_n, sum_sq * inv_n


if __name__ == "__main__":
    def _check(shape, key):
        k1, k2 = jax.random.split(key)
        pred = jax.random.normal(k1, shape, dtype=jnp.float32)
        target = jax.random.normal(k2, shape, dtype=jnp.float32)
        mae, mse = mae_loss(pred, target)
        jax.block_until_ready((mae, mse))
        ref_mae = jnp.mean(jnp.abs(pred - target))
        ref_mse = jnp.mean((pred - target) ** 2)
        assert jnp.allclose(mae, ref_mae, rtol=1e-5, atol=1e-6), (shape, mae, ref_mae)
        assert jnp.allclose(mse, ref_mse, rtol=1e-5, atol=1e-6), (shape, mse, ref_mse)

    key = jax.random.PRNGKey(0)
    k1, k2, k3 = jax.random.split(key, 3)
    # (batch_size, seq_len, features) as the module's forward expects.
    _check((2, 8, 32), k1)      # tiny: single block
    _check((4, 640, 256), k2)   # multi-block: exercises core split + ragged tail mask
    _check((3, 7, 19), k3)      # element count not a multiple of 128: pad fallback

    print("KERNEL_OK")
</pallas_src>

<mosaic_0001>
module attributes {stable_mosaic.version = 11 : i64} {
  func.func @_mae_mse_kernel(%arg0: i32, %arg1: i32, %arg2: memref<1x512xf32, #tpu.memory_space<vmem>>, %arg3: memref<1x512xf32, #tpu.memory_space<vmem>>, %arg4: memref<1x2x8x128xf32, #tpu.memory_space<vmem>>, %arg5: memref<1x512xf32, #tpu.memory_space<vmem>>, %arg6: memref<1x512xf32, #tpu.memory_space<vmem>>) attributes {dimension_semantics = [#tpu.dimension_semantics<parallel>, #tpu.dimension_semantics<arbitrary>], iteration_bounds = array<i64: 2, 1>, scalar_prefetch = 0 : i64, scratch_operands = 2 : i64, tpu.core_type = #tpu.core_type<tc>, window_params = [{transform_indices = @transform_0, window_bounds = array<i64: 1, 512>}, {transform_indices = @transform_1, window_bounds = array<i64: 1, 512>}, {transform_indices = @transform_2, window_bounds = array<i64: 1, 2, 8, 128>}]} {
    %c0_i32 = arith.constant 0 : i32
    %0 = arith.cmpi eq, %arg1, %c0_i32 : i32
    %1 = arith.extui %0 : i1 to i32
    %c0_i32_0 = arith.constant 0 : i32
    %2 = arith.cmpi ne, %1, %c0_i32_0 : i32
    scf.if %2 {
      %cst = arith.constant 0.000000e+00 : f32
      %19 = vector.broadcast %cst : f32 to vector<1x512xf32>
      %c0_12 = arith.constant 0 : index
      %c0_13 = arith.constant 0 : index
      %20 = vector.load %arg5[%c0_12, %c0_13] : memref<1x512xf32, #tpu.memory_space<vmem>>, vector<1x512xf32>
      tpu.vector_store %arg5[%c0_12, %c0_13], %19 {strides = array<i32>} : memref<1x512xf32, #tpu.memory_space<vmem>>, vector<1x512xf32>,
      %cst_14 = arith.constant 0.000000e+00 : f32
      %21 = vector.broadcast %cst_14 : f32 to vector<1x512xf32>
      %c0_15 = arith.constant 0 : index
      %c0_16 = arith.constant 0 : index
      %22 = vector.load %arg6[%c0_15, %c0_16] : memref<1x512xf32, #tpu.memory_space<vmem>>, vector<1x512xf32>
      tpu.vector_store %arg6[%c0_15, %c0_16], %21 {strides = array<i32>} : memref<1x512xf32, #tpu.memory_space<vmem>>, vector<1x512xf32>,
    } else {
    }
    %c0 = arith.constant 0 : index
    %c0_1 = arith.constant 0 : index
    %3 = vector.load %arg2[%c0, %c0_1] : memref<1x512xf32, #tpu.memory_space<vmem>>, vector<1x512xf32>
    %c0_2 = arith.constant 0 : index
    %c0_3 = arith.constant 0 : index
    %4 = vector.load %arg3[%c0_2, %c0_3] : memref<1x512xf32, #tpu.memory_space<vmem>>, vector<1x512xf32>
    %5 = arith.subf %3, %4 : vector<1x512xf32>
    %c1_i32 = arith.constant 1 : i32
    %6 = arith.muli %arg0, %c1_i32 : i32
    %7 = arith.addi %6, %arg1 : i32
    %c1_i32_4 = arith.constant 1 : i32
    %8 = arith.muli %7, %c1_i32_4 : i32
    %c1_i32_5 = arith.constant 1 : i32
    %9 = arith.subi %c1_i32_5, %8 : i32
    %c1_i32_6 = arith.constant 1 : i32
    %10 = arith.cmpi sge, %9, %c1_i32_6 : i32
    %11 = arith.extui %10 : i1 to i32
    %c0_i32_7 = arith.constant 0 : i32
    %12 = arith.cmpi ne, %11, %c0_i32_7 : i32
    scf.if %12 {
      %c0_12 = arith.constant 0 : index
      %c0_13 = arith.constant 0 : index
      %19 = vector.load %arg5[%c0_12, %c0_13] : memref<1x512xf32, #tpu.memory_space<vmem>>, vector<1x512xf32>
      %20 = math.absf %5 : vector<1x512xf32>
      %21 = arith.addf %19, %20 : vector<1x512xf32>
      %c0_14 = arith.constant 0 : index
      %c0_15 = arith.constant 0 : index
      %22 = vector.load %arg5[%c0_14, %c0_15] : memref<1x512xf32, #tpu.memory_space<vmem>>, vector<1x512xf32>
      tpu.vector_store %arg5[%c0_14, %c0_15], %21 {strides = array<i32>} : memref<1x512xf32, #tpu.memory_space<vmem>>, vector<1x512xf32>,
      %c0_16 = arith.constant 0 : index
      %c0_17 = arith.constant 0 : index
      %23 = vector.load %arg6[%c0_16, %c0_17] : memref<1x512xf32, #tpu.memory_space<vmem>>, vector<1x512xf32>
      %24 = arith.mulf %5, %5 : vector<1x512xf32>
      %25 = arith.addf %23, %24 : vector<1x512xf32>
      %c0_18 = arith.constant 0 : index
      %c0_19 = arith.constant 0 : index
      %26 = vector.load %arg6[%c0_18, %c0_19] : memref<1x512xf32, #tpu.memory_space<vmem>>, vector<1x512xf32>
      tpu.vector_store %arg6[%c0_18, %c0_19], %25 {strides = array<i32>} : memref<1x512xf32, #tpu.memory_space<vmem>>, vector<1x512xf32>,
    } else {
    }
    %c1_i32_8 = arith.constant 1 : i32
    %13 = arith.cmpi slt, %9, %c1_i32_8 : i32
    %14 = arith.extui %13 : i1 to i32
    %c0_i32_9 = arith.constant 0 : i32
    %15 = arith.cmpi ne, %14, %c0_i32_9 : i32
    scf.if %15 {
      %19 = tpu.iota {dimensions = array<i32: 0>} : vector<1x512xi32>
      %20 = vector.broadcast %9 : i32 to vector<1x512xi32>
      %21 = arith.cmpi slt, %19, %20 : vector<1x512xi32>
      %cst = arith.constant 0.000000e+00 : f32
      %22 = vector.broadcast %cst : f32 to vector<1x512xf32>
      %23 = arith.select %21, %5, %22 : vector<1x512xi1>, vector<1x512xf32>
      %c0_12 = arith.constant 0 : index
      %c0_13 = arith.constant 0 : index
      %24 = vector.load %arg5[%c0_12, %c0_13] : memref<1x512xf32, #tpu.memory_space<vmem>>, vector<1x512xf32>
      %25 = math.absf %23 : vector<1x512xf32>
      %26 = arith.addf %24, %25 : vector<1x512xf32>
      %c0_14 = arith.constant 0 : index
      %c0_15 = arith.constant 0 : index
      %27 = vector.load %arg5[%c0_14, %c0_15] : memref<1x512xf32, #tpu.memory_space<vmem>>, vector<1x512xf32>
      tpu.vector_store %arg5[%c0_14, %c0_15], %26 {strides = array<i32>} : memref<1x512xf32, #tpu.memory_space<vmem>>, vector<1x512xf32>,
      %c0_16 = arith.constant 0 : index
      %c0_17 = arith.constant 0 : index
      %28 = vector.load %arg6[%c0_16, %c0_17] : memref<1x512xf32, #tpu.memory_space<vmem>>, vector<1x512xf32>
      %29 = arith.mulf %23, %23 : vector<1x512xf32>
      %30 = arith.addf %28, %29 : vector<1x512xf32>
      %c0_18 = arith.constant 0 : index
      %c0_19 = arith.constant 0 : index
      %31 = vector.load %arg6[%c0_18, %c0_19] : memref<1x512xf32, #tpu.memory_space<vmem>>, vector<1x512xf32>
      tpu.vector_store %arg6[%c0_18, %c0_19], %30 {strides = array<i32>} : memref<1x512xf32, #tpu.memory_space<vmem>>, vector<1x512xf32>,
    } else {
    }
    %c0_i32_10 = arith.constant 0 : i32
    %16 = arith.cmpi eq, %arg1, %c0_i32_10 : i32
    %17 = arith.extui %16 : i1 to i32
    %c0_i32_11 = arith.constant 0 : i32
    %18 = arith.cmpi ne, %17, %c0_i32_11 : i32
    scf.if %18 {
      %c0_12 = arith.constant 0 : index
      %c0_13 = arith.constant 0 : index
      %19 = vector.load %arg5[%c0_12, %c0_13] : memref<1x512xf32, #tpu.memory_space<vmem>>, vector<1x512xf32>
      %20 = vector.shape_cast %19 : vector<1x512xf32> to vector<1x1x512xf32>
      %cst = arith.constant dense<0.000000e+00> : vector<1xf32>
      %21 = vector.multi_reduction <add>, %20, %cst [1, 2] : vector<1x1x512xf32> to vector<1xf32>
      %22 = vector.shape_cast %21 : vector<1xf32> to vector<1x1x1xf32>
      %23 = vector.extract %22[0, 0, 0] : f32 from vector<1x1x1xf32>
      %24 = vector.broadcast %23 : f32 to vector<8x128xf32>
      %c0_14 = arith.constant 0 : index
      %c0_15 = arith.constant 0 : index
      %c0_16 = arith.constant 0 : index
      %c0_17 = arith.constant 0 : index
      %25 = vector.load %arg4[%c0_14, %c0_15, %c0_16, %c0_17] : memref<1x2x8x128xf32, #tpu.memory_space<vmem>>, vector<1x1x8x128xf32>
      %26 = vector.shape_cast %25 : vector<1x1x8x128xf32> to vector<8x128xf32>
      %27 = vector.shape_cast %24 : vector<8x128xf32> to vector<1x1x8x128xf32>
      tpu.vector_store %arg4[%c0_14, %c0_15, %c0_16, %c0_17], %27 {strides = array<i32>} : memref<1x2x8x128xf32, #tpu.memory_space<vmem>>, vector<1x1x8x128xf32>,
      %c0_18 = arith.constant 0 : index
      %c0_19 = arith.constant 0 : index
      %28 = vector.load %arg6[%c0_18, %c0_19] : memref<1x512xf32, #tpu.memory_space<vmem>>, vector<1x512xf32>
      %29 = vector.shape_cast %28 : vector<1x512xf32> to vector<1x1x512xf32>
      %cst_20 = arith.constant dense<0.000000e+00> : vector<1xf32>
      %30 = vector.multi_reduction <add>, %29, %cst_20 [1, 2] : vector<1x1x512xf32> to vector<1xf32>
      %31 = vector.shape_cast %30 : vector<1xf32> to vector<1x1x1xf32>
      %32 = vector.extract %31[0, 0, 0] : f32 from vector<1x1x1xf32>
      %33 = vector.broadcast %32 : f32 to vector<8x128xf32>
      %c0_21 = arith.constant 0 : index
      %c1 = arith.constant 1 : index
      %c0_22 = arith.constant 0 : index
      %c0_23 = arith.constant 0 : index
      %34 = vector.load %arg4[%c0_21, %c1, %c0_22, %c0_23] : memref<1x2x8x128xf32, #tpu.memory_space<vmem>>, vector<1x1x8x128xf32>
      %35 = vector.shape_cast %34 : vector<1x1x8x128xf32> to vector<8x128xf32>
      %36 = vector.shape_cast %33 : vector<8x128xf32> to vector<1x1x8x128xf32>
      tpu.vector_store %arg4[%c0_21, %c1, %c0_22, %c0_23], %36 {strides = array<i32>} : memref<1x2x8x128xf32, #tpu.memory_space<vmem>>, vector<1x1x8x128xf32>,
    } else {
    }
    return
  }
  func.func @transform_0(%arg0: i32, %arg1: i32) -> (i32, i32) {
    %c1_i32 = arith.constant 1 : i32
    %0 = arith.muli %arg0, %c1_i32 : i32
    %1 = arith.addi %0, %arg1 : i32
    %c0_i32 = arith.constant 0 : i32
    %2 = arith.minsi %1, %c0_i32 : i32
    %c0_i32_0 = arith.constant 0 : i32
    %c0_i32_1 = arith.constant 0 : i32
    return %2, %c0_i32_0 : i32, i32
  }
  func.func @transform_1(%arg0: i32, %arg1: i32) -> (i32, i32) {
    %c1_i32 = arith.constant 1 : i32
    %0 = arith.muli %arg0, %c1_i32 : i32
    %1 = arith.addi %0, %arg1 : i32
    %c0_i32 = arith.constant 0 : i32
    %2 = arith.minsi %1, %c0_i32 : i32
    %c0_i32_0 = arith.constant 0 : i32
    %c0_i32_1 = arith.constant 0 : i32
    return %2, %c0_i32_0 : i32, i32
  }
  func.func @transform_2(%arg0: i32, %arg1: i32) -> (i32, i32, i32, i32) {
    %c0_i32 = arith.constant 0 : i32
    %c0_i32_0 = arith.constant 0 : i32
    %c0_i32_1 = arith.constant 0 : i32
    %c0_i32_2 = arith.constant 0 : i32
    return %arg0, %c0_i32, %c0_i32_0, %c0_i32_1 : i32, i32, i32, i32
  }
}

</mosaic_0001>

<bundles_post_ra>
// kernel: mae_loss.1
= control target key start
LH: loop header
LB: loop body
LE: loop exit
PB: predicated region body
PF: predicated region fallthrough
CT: control target
= control target key end

     0   :  { %s604_s9 = smov 0   ;;  %s606_s10 = smov 0   ;;  %s676_s0 = inlined_call_operand.vmem [shape: f32[1,512], index: 0, kind: input, shape index: {}]   ;;  %s677_s1 = inlined_call_operand.vmem [shape: f32[1,512], index: 1, kind: input, shape index: {}]   ;;  %s678_s2 = inlined_call_operand.vmem [shape: f32[2,2,8,128], index: 2, kind: output, shape index: {}]  }
   0x1   :  { %s608_s11 = smov 0  }
   0x2 LB: > { %s24_s12 = sadd.s32 1, %s581_s10  ;;  %p516_p0 = scmp.ge.s32.totalorder %s585_s11, 1  ;;  %s585_s11 = sphi %s608_s11, %s12_s11   ;;  %s581_s10 = sphi %s606_s10, %s682_s10   ;;  %s577_s9 = sphi %s604_s9, %s681_s9  }
   0x3   : > { %p26_p1 = scmp.ge.s32.totalorder %s24_s12, 2  ;;  %p156_p2 = scmp.lt.s32.totalorder %s585_s11, 3 }
   0x5   : > { %s684_s12 = smov (%p26_p1, %s24_s12), 0  ;;  %p157_p3 = pnand %p516_p0, %p156_p2 }
   0x6   : > { %p188_p4 = scmp.lt.s32.totalorder (!%p157_p3), %s577_s9, 0  ;;  %p207_p5 = scmp.lt.s32.totalorder (!%p157_p3), %s577_s9, 1 }
   0x7   : > { %160 = sbr.rel (%p157_p3) target bundleno = 277 (0x115), region = 28  ;;  %s622_s13 = ssub.s32 (!%p157_p3), 1, %s577_s9 }
   0x8   : > { %p527_p6 = scmp.lt.s32.totalorder (!%p157_p3), %s622_s13, 1 }
   0xc   : > { %v216_v0 = vlaneseq  ;;  %s189_s14 = scalar_select %p188_p4, %s577_s9, 0  ;;  %v587_v2 = vmov 0.0  }
   0xd   : > { %s686_s9 = smov (!%p207_p5, %s577_s9), 1 }
   0xe   : > { %vm625_vm0 = vcmp.lt.s32.totalorder %v216_v0, 512  ;;  %s688_s14 = smov (!%p188_p4, %s189_s14), 0  ;;  %s532_s15 = sshll.u32 %s686_s9, 4 }
   0xf   : > { %220 = vst.msk [vmem:[#allocation2] sm:$0xf] %vm625_vm0, %v587_v2  ;;  %221 = vst.msk [vmem:[#allocation3] sm:$0xf] %vm625_vm0, %v587_v2  ;;  %s520_s16 = sshll.u32 %s688_s14, 2  ;;  %s636_s19 = scalar_lea.vmem %s678_s2, %s532_s15 }
  0x10   : > { %s193_s22 = scalar_lea.vmem %s676_s0, %s520_s16  ;;  %s203_s25 = scalar_lea.vmem %s677_s1, %s520_s16 }
  0x11   : > { %v222_v3 = vld [vmem:[%s193_s22] sm:$0xf]  ;;  %230 = sbr.rel (%p527_p6) target bundleno = 27 (0x1b), region = 36 }
  0x12   : > { %v223_v4 = vld [vmem:[%s203_s25] sm:$0xf] }
  0x13   : > { %v224_v5 = vsub.f32 %v222_v3, %v223_v4 }
  0x16   : > { %v231_v6 = vld [vmem:[#allocation2] sm:$0xf]  ;;  %v232_v7 = vand.u32 2147483647, %v224_v5  ;;  %v239_v8 = vld [vmem:[#allocation3] sm:$0xf]  ;;  %v240_v9 = vmul.f32 %v224_v5, %v224_v5 }
  0x18   : > { %v233_v10 = vadd.f32 %v232_v7, %v231_v6  ;;  %v241_v11 = vadd.f32 %v240_v9, %v239_v8 }
  0x1a   : > { %238 = vst.msk [vmem:[#allocation2] sm:$0xf] %vm625_vm0, %v233_v10  ;;  %242 = vst.msk [vmem:[#allocation3] sm:$0xf] %vm625_vm0, %v241_v11 }
  0x1b PF: > { %p528_p7 = scmp.ge.s32.totalorder %s622_s13, 1 }
  0x1d   : > { %246 = sbr.rel (%p528_p7) target bundleno = 56 (0x38), region = 40 }
  0x22   : > { %v248_v12 = vshrl.u32 %v216_v0, 7  ;;  %v249_v13 = vstv %s622_s13  ;;  %v588_v14 = vmov 1966171168   ;;  %v276_v47 = vld [vmem:[#allocation2] sm:$0xf] }
  0x23   : > { %v288_v15 = vunpack.c.l.s4 %v588_v14  ;;  %v316_v50 = vld [vmem:[#allocation3] sm:$0xf] }
  0x24   : > { %v254_v16 = vsub.s32 0, %v248_v12  ;;  %v258_v17 = vsub.s32 1, %v248_v12  ;;  %v262_v18 = vsub.s32 2, %v248_v12  ;;  %vm250_vm1 = vcmp.lt.s32.totalorder %v248_v12, %v249_v13 }
  0x25   : > { %v266_v19 = vsub.s32 3, %v248_v12  ;;  %v289_v20 = vunpack.c.0.s8 %v288_v15 }
  0x26   : > { %v255_v21 = vrot.slane %v224_v5, %v254_v16  ;;  %v259_v22 = vrot.slane %v224_v5, %v258_v17  ;;  %v263_v23 = vrot.slane %v224_v5, %v262_v18 }
  0x27   : > { %v267_v24 = vrot.slane %v224_v5, %v266_v19  ;;  %v292_v28 = vsub.s32 %v289_v20, %v248_v12 }
  0x28   : > { %v272_v25 = vsel %vm250_vm1, %v255_v21, 0.0  ;;  %v273_v26 = vsel %vm250_vm1, %v259_v22, 0.0  ;;  %v274_v27 = vsel %vm250_vm1, %v263_v23, 0.0 }
  0x29   : > { %v275_v29 = vsel %vm250_vm1, %v267_v24, 0.0  ;;  %v277_v30 = vand.u32 2147483647, %v272_v25  ;;  %v278_v31 = vand.u32 2147483647, %v273_v26  ;;  %v317_v32 = vmul.f32 %v272_v25, %v272_v25 }
  0x2a   : > { %v279_v33 = vand.u32 2147483647, %v274_v27  ;;  %v280_v34 = vand.u32 2147483647, %v275_v29  ;;  %v318_v35 = vmul.f32 %v273_v26, %v273_v26  ;;  %v319_v36 = vmul.f32 %v274_v27, %v274_v27 }
  0x2b   : > { %v285_v37 = vcombine.low %v277_v30, %v278_v31  ;;  %v320_v38 = vmul.f32 %v275_v29, %v275_v29 }
  0x2c   : > { %v286_v39 = vcombine.low %v279_v33, %v280_v34  ;;  %v325_v40 = vcombine.low %v317_v32, %v318_v35 }
  0x2d   : > { %v293_v41 = vrot.slane %v285_v37, %v292_v28  ;;  %v326_v42 = vcombine.low %v319_v36, %v320_v38 }
  0x2e   : > { %v300_v43 = vrot.slane %v286_v39, %v292_v28  ;;  %v333_v44 = vrot.slane %v325_v40, %v292_v28 }
  0x2f   : > { %v340_v45 = vrot.slane %v326_v42, %v292_v28 }
  0x30   : > { %v301_v46 = vcombine.low %v293_v41, %v300_v43 }
  0x31   : > { %v341_v48 = vcombine.low %v333_v44, %v340_v45 }
  0x32   : > { %v308_v49 = vrot.slane %v301_v46, %v292_v28 }
  0x33   : > { %v348_v51 = vrot.slane %v341_v48, %v292_v28 }
  0x34   : > { %v310_v52 = vadd.f32 %v308_v49, %v276_v47 }
  0x35   : > { %v350_v53 = vadd.f32 %v348_v51, %v316_v50 }
  0x36   : > { %315 = vst.msk [vmem:[#allocation2] sm:$0xf] %vm625_vm0, %v310_v52 }
  0x37   : > { %351 = vst.msk [vmem:[#allocation3] sm:$0xf] %vm625_vm0, %v350_v53 }
  0x38 PF: > { %v358_v54 = vshrl.u32 %v216_v0, 7  ;;  %vm377_vm2 = vcmask 1040384  }
  0x3a   : > { %v359_v56 = vsub.s32 0, %v358_v54  ;;  %v363_v57 = vsub.s32 1, %v358_v54  ;;  %v367_v58 = vsub.s32 2, %v358_v54  ;;  %v371_v59 = vsub.s32 3, %v358_v54 }
  0x3d   : > { %v355_v55 = vld [vmem:[#allocation2] sm:$0xf] }
  0x3e   : > { %v396_v60 = vld [vmem:[#allocation3] sm:$0xf]  ;;  %v360_v61 = vrot.slane %v355_v55, %v359_v56  ;;  %v364_v62 = vrot.slane %v355_v55, %v363_v57  ;;  %v368_v63 = vrot.slane %v355_v55, %v367_v58  ;;  %v372_v2 = vrot.slane %v355_v55, %v371_v59 }
  0x3f   : > { %v401_v3 = vrot.slane %v396_v60, %v359_v56  ;;  %v405_v4 = vrot.slane %v396_v60, %v363_v57  ;;  %v409_v5 = vrot.slane %v396_v60, %v367_v58  ;;  %v413_v7 = vrot.slane %v396_v60, %v371_v59 }
  0x40   : > { %v378_v1 = vsel %vm377_vm2, %v360_v61, 0.0  ;;  %v379_v6 = vsel %vm377_vm2, %v364_v62, 0.0  ;;  %v381_v0 = vsel %vm377_vm2, %v368_v63, 0.0  ;;  %v383_v12 = vsel %vm377_vm2, %v372_v2, 0.0 }
  0x41   : > { %v380_v8 = vadd.f32 %v379_v6, %v378_v1  ;;  %v418_v9 = vsel %vm377_vm2, %v401_v3, 0.0  ;;  %v419_v10 = vsel %vm377_vm2, %v405_v4, 0.0  ;;  %v421_v11 = vsel %vm377_vm2, %v409_v5, 0.0 }
  0x42   : > { %v420_v13 = vadd.f32 %v419_v10, %v418_v9  ;;  %v423_v16 = vsel %vm377_vm2, %v413_v7, 0.0 }
  0x43   : > { %v382_v14 = vadd.f32 %v381_v0, %v380_v8 }
  0x44   : > { %v422_v15 = vadd.f32 %v421_v11, %v420_v13 }
  0x45   : > { %v384_v17 = vadd.f32 %v383_v12, %v382_v14 }
  0x46   : > { %v424_v18 = vadd.f32 %v423_v16, %v422_v15 }
  0x47   : > { %385 = vadd.xlane.f32.xlu0 %v384_v17 }
  0x4b   : > { %425 = vadd.xlane.f32.xlu0 %v424_v18 }
  0xd0   : > { %v386_v19 = vpop.xlane.xlu0 %385 }
  0xd1   : > { %v387_v20 = vrot.slane %v386_v19, 4 }
  0xd3   : > { %v388_v21 = vadd.f32 %v387_v20, %v386_v19 }
  0xd4   : > { %v426_v22 = vpop.xlane.xlu0 %425 }
  0xd5   : > { %v389_v23 = vrot.slane %v388_v21, 2  ;;  %v427_v24 = vrot.slane %v426_v22, 4 }
  0xd7   : > { %v428_v25 = vadd.f32 %v427_v24, %v426_v22  ;;  %v390_v26 = vadd.f32 %v389_v23, %v388_v21 }
  0xd9   : > { %v429_v27 = vrot.slane %v428_v25, 2  ;;  %v391_v28 = vrot.slane %v390_v26, 1 }
  0xdb   : > { %v430_v29 = vadd.f32 %v429_v27, %v428_v25  ;;  %v392_v30 = vadd.f32 %v391_v28, %v390_v26 }
  0xdd   : > { %533 = vpush %v392_v30  ;;  %v431_v31 = vrot.slane %v430_v29, 1 }
  0xdf   : > { %v432_v32 = vadd.f32 %v431_v31, %v430_v29 }
  0xe1   : > { %535 = vpush %v432_v32 }
 0x10e   : > { %s534_s26 = spop %533 }
 0x10f   : > { %v394_v33 = vstv %s534_s26 }
 0x110   : > { %395 = vst [vmem:[%s636_s19] sm:$0xff] %v394_v33 }
 0x112   : > { %s536_s27 = spop %535 }
 0x113   : > { %v434_v34 = vstv %s536_s27 }
 0x114   : > { %529 = vst [vmem:[%s636_s19 + $0x8] sm:$0xff] %v434_v34 }
 0x115 PF: > { %s12_s11 = sadd.s32 1, %s585_s11   ;;  %s681_s9 = smov %s581_s10 }
 0x116   : > { %p9_p8 = scmp.ge.s32.totalorder %s12_s11, 4   ;;  %s682_s10 = smov %s684_s12 }
 0x118   :  { %11 = sbr.rel (!%p9_p8) target bundleno = 2 (0x2), region = 78 }

</bundles_post_ra>
